<compile_context>
chip_gen: v5e
topology: v5e:2x2
jax: 0.10.0
libtpu: 0.0.40
codegen_flags: <defaults>
</compile_context>

<pallas_src>
import functools

import jax
import jax.numpy as jnp
from jax.experimental import pallas as pl
from jax.experimental.pallas import tpu as pltpu


def _task_network_kernel(n_hidden, x_ref, *refs):
    """refs = (w1, b1, ..., wN, bN, w_out, b_out, o_ref).

    x_ref : (TB, input_dim) batch tile.
    w_i   : (out_i, in_i)   bf16  (PyTorch Linear.weight layout).
    b_i   : (out_i, 1)      f32 column.
    w_out : (hidden_last,1) f32 column.
    b_out : (1, 1)          f32.
    o_ref : (1, TB) lane-dense sigmoid output tile.
    """
    o_ref = refs[-1]
    params = refs[:-1]

    # First hidden layer: contract feature dims of W (h1, in) and x (TB, in)
    # directly on the MXU (A @ B.T) -> transposed activations (h1, TB) with the
    # batch on the lane axis; no explicit transpose needed.
    xb = x_ref[...].astype(jnp.bfloat16)
    w0 = params[0][...]
    b0 = params[1][...]
    acc = jax.lax.dot_general(
        w0, xb, (((1,), (1,)), ((), ())), preferred_element_type=jnp.float32
    )
    h_t = jnp.maximum(acc + b0, 0.0)                       # (h1, TB) f32

    # Remaining hidden layers: plain (out, in) @ (in, TB) MXU matmuls.
    for i in range(1, n_hidden):
        w = params[2 * i][...]
        b = params[2 * i + 1][...]
        acc = jnp.dot(w, h_t.astype(jnp.bfloat16),
                      preferred_element_type=jnp.float32)
        h_t = jnp.maximum(acc + b, 0.0)

    # Output Linear(prev, 1): an N=1 MXU matmul wastes the array, so use a VPU
    # multiply + sublane reduction (XLU) instead -> lane-dense (1, TB) logits.
    w_out = params[2 * n_hidden][...]                      # (prev, 1) f32
    b_out = params[2 * n_hidden + 1][...]                  # (1, 1)    f32
    logits = jnp.sum(h_t * w_out, axis=0, keepdims=True) + b_out
    o_ref[...] = jax.nn.sigmoid(logits).astype(o_ref.dtype)


def init_task_network_params(key, input_dim, hidden_layers, dtype=jnp.float32):
    """PyTorch-layout params: [(W (out,in), b (out,)), ..., (W_out (1,prev), b_out (1,))]."""
    params = []
    prev = input_dim
    for out_dim in list(hidden_layers) + [1]:
        key, wk, bk = jax.random.split(key, 3)
        bound = 1.0 / (prev ** 0.5)
        w = jax.random.uniform(wk, (out_dim, prev), dtype, -bound, bound)
        b = jax.random.uniform(bk, (out_dim,), dtype, -bound, bound)
        params.append((w, b))
        prev = out_dim
    return params


def task_network_forward(x, params, *, block_batch=1024,
                         compute_dtype=jnp.bfloat16):
    """TaskNetwork forward: single pallas_call with a 1-D batch grid."""
    batch, input_dim = x.shape
    n_hidden = len(params) - 1
    assert n_hidden >= 1, "TaskNetwork needs at least one hidden layer"

    # --- layout / dtype plumbing for the kernel (tiny arrays) ----------------
    kparams = []
    for w, b in params[:-1]:
        kparams.append(w.astype(compute_dtype))                 # (out, in) bf16
        kparams.append(b.reshape(-1, 1).astype(jnp.float32))    # (out, 1)  f32
    w_out, b_out = params[-1]
    kparams.append(w_out.reshape(-1, 1).astype(jnp.float32))    # (prev, 1) f32
    kparams.append(b_out.reshape(1, 1).astype(jnp.float32))     # (1, 1)    f32

    # --- batch tiling ---------------------------------------------------------
    tb = min(block_batch, ((batch + 127) // 128) * 128)  # lane-dense out tile
    b_pad = pl.cdiv(batch, tb) * tb
    if b_pad != batch:
        x = jnp.pad(x, ((0, b_pad - batch), (0, 0)))
    grid = (b_pad // tb,)

    in_specs = [pl.BlockSpec((tb, input_dim), lambda i: (i, 0))]
    # Constant block index -> params fetched once and kept VMEM-resident.
    in_specs += [pl.BlockSpec(p.shape, lambda i: (0, 0)) for p in kparams]
    out_specs = pl.BlockSpec((1, tb), lambda i: (0, i))

    # --- advisory cost estimate ----------------------------------------------
    flops = 0
    prev = input_dim
    for w, _ in params[:-1]:
        flops += 2 * b_pad * prev * w.shape[0]
        prev = w.shape[0]
    flops += 2 * b_pad * prev
    bytes_accessed = (
        x.size * x.dtype.itemsize
        + b_pad * x.dtype.itemsize
        + sum(int(p.size) * p.dtype.itemsize for p in kparams)
    )
    cost = pl.CostEstimate(flops=int(flops), transcendentals=int(b_pad),
                           bytes_accessed=int(bytes_accessed))

    out = pl.pallas_call(
        functools.partial(_task_network_kernel, n_hidden),
        grid=grid,
        in_specs=in_specs,
        out_specs=out_specs,
        out_shape=jax.ShapeDtypeStruct((1, b_pad), x.dtype),
        compiler_params=pltpu.CompilerParams(
            dimension_semantics=("parallel",)),
        cost_estimate=cost,
    )(x, *kparams)

    # Lane-dense (1, B_pad) slab -> (batch, 1) column (free layout plumbing).
    return out[0, :batch].reshape(batch, 1)


def task_network_reference(x, params):
    """Pure-JAX f32 reference matching the PyTorch module (eval mode)."""
    h = x.astype(jnp.float32)
    for w, b in params[:-1]:
        h = jnp.maximum(h @ w.astype(jnp.float32).T + b.astype(jnp.float32), 0.0)
    w_out, b_out = params[-1]
    logits = h @ w_out.astype(jnp.float32).T + b_out.astype(jnp.float32)
    return jax.nn.sigmoid(logits)


if __name__ == "__main__":
    key = jax.random.PRNGKey(0)

    batch = 2000            # non-multiple of the tile to exercise padding path
    input_dim = 32
    hidden_layers = [32, 16]

    k_x, k_p = jax.random.split(key)
    # bf16 inputs halve the HBM bytes streamed by this memory-bound kernel.
    x = jax.random.normal(k_x, (batch, input_dim),
                          dtype=jnp.float32).astype(jnp.bfloat16)
    params = init_task_network_params(k_p, input_dim, hidden_layers)

    out = jax.block_until_ready(
        task_network_forward(x, params, block_batch=1024))
    ref = task_network_reference(x, params)

    assert out.shape == (batch, 1), out.shape
    err = float(jnp.max(jnp.abs(out.astype(jnp.float32) - ref)))
    # bf16 MXU inputs / bf16 output => tolerate ~1e-2 vs the f32 reference.
    assert err < 2e-2, f"max abs diff {err}"

    print("KERNEL_OK")
</pallas_src>

<mosaic_0001>
module attributes {stable_mosaic.version = 11 : i64} {
  func.func @_task_network_kernel(%arg0: i32, %arg1: memref<1024x32xbf16, #tpu.memory_space<vmem>>, %arg2: memref<32x32xbf16, #tpu.memory_space<vmem>>, %arg3: memref<32x1xf32, #tpu.memory_space<vmem>>, %arg4: memref<16x32xbf16, #tpu.memory_space<vmem>>, %arg5: memref<16x1xf32, #tpu.memory_space<vmem>>, %arg6: memref<16x1xf32, #tpu.memory_space<vmem>>, %arg7: memref<1x1xf32, #tpu.memory_space<vmem>>, %arg8: memref<1x1024xbf16, #tpu.memory_space<vmem>>) attributes {dimension_semantics = [#tpu.dimension_semantics<parallel>], iteration_bounds = array<i64: 2>, scalar_prefetch = 0 : i64, scratch_operands = 0 : i64, tpu.core_type = #tpu.core_type<tc>, window_params = [{transform_indices = @transform_0, window_bounds = array<i64: 1024, 32>}, {pipeline_mode = #tpu.pipeline_mode<synchronous>, transform_indices = @transform_1, window_bounds = array<i64: 32, 32>}, {pipeline_mode = #tpu.pipeline_mode<synchronous>, transform_indices = @transform_2, window_bounds = array<i64: 32, 1>}, {pipeline_mode = #tpu.pipeline_mode<synchronous>, transform_indices = @transform_3, window_bounds = array<i64: 16, 32>}, {pipeline_mode = #tpu.pipeline_mode<synchronous>, transform_indices = @transform_4, window_bounds = array<i64: 16, 1>}, {pipeline_mode = #tpu.pipeline_mode<synchronous>, transform_indices = @transform_5, window_bounds = array<i64: 16, 1>}, {pipeline_mode = #tpu.pipeline_mode<synchronous>, transform_indices = @transform_6, window_bounds = array<i64: 1, 1>}, {transform_indices = @transform_7, window_bounds = array<i64: 1, 1024>}]} {
    %c0 = arith.constant 0 : index
    %c0_0 = arith.constant 0 : index
    %0 = vector.load %arg1[%c0, %c0_0] : memref<1024x32xbf16, #tpu.memory_space<vmem>>, vector<1024x32xbf16>
    %c0_1 = arith.constant 0 : index
    %c0_2 = arith.constant 0 : index
    %1 = vector.load %arg2[%c0_1, %c0_2] : memref<32x32xbf16, #tpu.memory_space<vmem>>, vector<32x32xbf16>
    %c0_3 = arith.constant 0 : index
    %c0_4 = arith.constant 0 : index
    %2 = vector.load %arg3[%c0_3, %c0_4] : memref<32x1xf32, #tpu.memory_space<vmem>>, vector<32x1xf32>
    %cst = arith.constant dense<0.000000e+00> : vector<32x1024xf32>
    %3 = tpu.matmul %1, %0, %cst {dimension_numbers = #tpu.dot_dimension_numbers<[1], [1], [0], [0], [0, 0, 1, 0], [], []>} : vector<32x32xbf16>, vector<1024x32xbf16>, vector<32x1024xf32> -> vector<32x1024xf32>
    %4 = vector.broadcast %2 : vector<32x1xf32> to vector<32x1024xf32>
    %5 = arith.addf %3, %4 : vector<32x1024xf32>
    %cst_5 = arith.constant 0.000000e+00 : f32
    %6 = vector.broadcast %cst_5 : f32 to vector<32x1024xf32>
    %7 = arith.maximumf %5, %6 : vector<32x1024xf32>
    %c0_6 = arith.constant 0 : index
    %c0_7 = arith.constant 0 : index
    %8 = vector.load %arg4[%c0_6, %c0_7] : memref<16x32xbf16, #tpu.memory_space<vmem>>, vector<16x32xbf16>
    %c0_8 = arith.constant 0 : index
    %c0_9 = arith.constant 0 : index
    %9 = vector.load %arg5[%c0_8, %c0_9] : memref<16x1xf32, #tpu.memory_space<vmem>>, vector<16x1xf32>
    %10 = arith.truncf %7 : vector<32x1024xf32> to vector<32x1024xbf16>
    %cst_10 = arith.constant dense<0.000000e+00> : vector<16x1024xf32>
    %11 = tpu.matmul %8, %10, %cst_10 {dimension_numbers = #tpu.dot_dimension_numbers<[1], [0], [0], [1], [0, 0, 1, 1], [], []>} : vector<16x32xbf16>, vector<32x1024xbf16>, vector<16x1024xf32> -> vector<16x1024xf32>
    %12 = vector.broadcast %9 : vector<16x1xf32> to vector<16x1024xf32>
    %13 = arith.addf %11, %12 : vector<16x1024xf32>
    %cst_11 = arith.constant 0.000000e+00 : f32
    %14 = vector.broadcast %cst_11 : f32 to vector<16x1024xf32>
    %15 = arith.maximumf %13, %14 : vector<16x1024xf32>
    %c0_12 = arith.constant 0 : index
    %c0_13 = arith.constant 0 : index
    %16 = vector.load %arg6[%c0_12, %c0_13] : memref<16x1xf32, #tpu.memory_space<vmem>>, vector<16x1xf32>
    %c0_14 = arith.constant 0 : index
    %c0_15 = arith.constant 0 : index
    %17 = vector.load %arg7[%c0_14, %c0_15] : memref<1x1xf32, #tpu.memory_space<vmem>>, vector<1x1xf32>
    %18 = vector.broadcast %16 : vector<16x1xf32> to vector<16x1024xf32>
    %19 = arith.mulf %15, %18 : vector<16x1024xf32>
    %cst_16 = arith.constant dense<0.000000e+00> : vector<1024xf32>
    %20 = vector.multi_reduction <add>, %19, %cst_16 [0] : vector<16x1024xf32> to vector<1024xf32>
    %21 = vector.shape_cast %20 : vector<1024xf32> to vector<1x1024xf32>
    %22 = vector.broadcast %17 : vector<1x1xf32> to vector<1x1024xf32>
    %23 = arith.addf %21, %22 : vector<1x1024xf32>
    %24 = arith.negf %23 : vector<1x1024xf32>
    %25 = math.exp %24 : vector<1x1024xf32>
    %cst_17 = arith.constant 1.000000e+00 : f32
    %26 = vector.broadcast %cst_17 : f32 to vector<1x1024xf32>
    %27 = arith.addf %26, %25 : vector<1x1024xf32>
    %28 = arith.divf %26, %27 : vector<1x1024xf32>
    %29 = arith.truncf %28 : vector<1x1024xf32> to vector<1x1024xbf16>
    %c0_18 = arith.constant 0 : index
    %c0_19 = arith.constant 0 : index
    %30 = vector.load %arg8[%c0_18, %c0_19] : memref<1x1024xbf16, #tpu.memory_space<vmem>>, vector<1x1024xbf16>
    tpu.vector_store %arg8[%c0_18, %c0_19], %29 {strides = array<i32>} : memref<1x1024xbf16, #tpu.memory_space<vmem>>, vector<1x1024xbf16>,
    return
  }
  func.func @transform_0(%arg0: i32) -> (i32, i32) {
    %c0_i32 = arith.constant 0 : i32
    %c0_i32_0 = arith.constant 0 : i32
    return %arg0, %c0_i32 : i32, i32
  }
  func.func @transform_1(%arg0: i32) -> (i32, i32) {
    %c0_i32 = arith.constant 0 : i32
    %c0_i32_0 = arith.constant 0 : i32
    %c0_i32_1 = arith.constant 0 : i32
    return %c0_i32, %c0_i32_0 : i32, i32
  }
  func.func @transform_2(%arg0: i32) -> (i32, i32) {
    %c0_i32 = arith.constant 0 : i32
    %c0_i32_0 = arith.constant 0 : i32
    %c0_i32_1 = arith.constant 0 : i32
    return %c0_i32, %c0_i32_0 : i32, i32
  }
  func.func @transform_3(%arg0: i32) -> (i32, i32) {
    %c0_i32 = arith.constant 0 : i32
    %c0_i32_0 = arith.constant 0 : i32
    %c0_i32_1 = arith.constant 0 : i32
    return %c0_i32, %c0_i32_0 : i32, i32
  }
  func.func @transform_4(%arg0: i32) -> (i32, i32) {
    %c0_i32 = arith.constant 0 : i32
    %c0_i32_0 = arith.constant 0 : i32
    %c0_i32_1 = arith.constant 0 : i32
    return %c0_i32, %c0_i32_0 : i32, i32
  }
  func.func @transform_5(%arg0: i32) -> (i32, i32) {
    %c0_i32 = arith.constant 0 : i32
    %c0_i32_0 = arith.constant 0 : i32
    %c0_i32_1 = arith.constant 0 : i32
    return %c0_i32, %c0_i32_0 : i32, i32
  }
  func.func @transform_6(%arg0: i32) -> (i32, i32) {
    %c0_i32 = arith.constant 0 : i32
    %c0_i32_0 = arith.constant 0 : i32
    %c0_i32_1 = arith.constant 0 : i32
    return %c0_i32, %c0_i32_0 : i32, i32
  }
  func.func @transform_7(%arg0: i32) -> (i32, i32) {
    %c0_i32 = arith.constant 0 : i32
    %c0_i32_0 = arith.constant 0 : i32
    return %c0_i32, %arg0 : i32, i32
  }
}

</mosaic_0001>

<bundles_post_ra>
// kernel: tpu_custom_call.1
= control target key start
LH: loop header
LB: loop body
LE: loop exit
PB: predicated region body
PF: predicated region fallthrough
CT: control target
= control target key end

     0   :  { %s2944_s0 = inlined_call_operand.vmem [shape: bf16[2048,32], index: 0, kind: input, shape index: {}]   ;;  %s2945_s1 = inlined_call_operand.vmem [shape: bf16[32,32], index: 1, kind: input, shape index: {}]   ;;  %s2946_s2 = inlined_call_operand.vmem [shape: f32[32,1], index: 2, kind: input, shape index: {}]   ;;  %s2947_s3 = inlined_call_operand.vmem [shape: bf16[16,32], index: 3, kind: input, shape index: {}]   ;;  %s2948_s4 = inlined_call_operand.vmem [shape: f32[16,1], index: 4, kind: input, shape index: {}]   ;;  %s2949_s5 = inlined_call_operand.vmem [shape: f32[16,1], index: 5, kind: input, shape index: {}]   ;;  %s2950_s6 = inlined_call_operand.<no memory space> [shape: f32[1,1], index: 6, kind: input, shape index: {}]   ;;  %s2951_s7 = inlined_call_operand.hbm [shape: bf16[1,2048], index: 7, kind: output, shape index: {}]  }
   0x1   :  { %v12_v0 = vstv %s2950_s6 }
   0x2   :  { %13 = vst [vmem:[#allocation2] sm:$0x1] %v12_v0 }
   0x3   :  { %14 = vsyncpa [#allocation4], 0 }
   0x4   :  { %16 = vsyncpa [#allocation4 + $0x1], 0  ;;  %s2277_s26 = smov 0   ;;  %s2279_s27 = smov 0  }
   0x5   :  { %s2281_s28 = smov 0   ;;  %s2283_s29 = smov 0  }
   0x6 LB: > { %s2298_s6 = sadd.s32 4294967295, %s2231_s29   ;;  %s1716_s30 = sadd.s32 4294967294, %s2231_s29   ;;  %s2231_s29 = sphi %s2283_s29, %s3002_s29   ;;  %s2227_s28 = sphi %s2281_s28, %s3001_s28   ;;  %s2223_s27 = sphi %s2279_s27, %s3000_s27   ;;  %s2219_s26 = sphi %s2277_s26, %s2999_s26  }
   0x7   : > { %s2302_s8 = sadd.s32 1, %s2231_s29   ;;  %s181_s9 = sadd.s32 1, %s2227_s28 }
   0x8   : > { %s178_s10 = ssub.s32 %s2231_s29, %s2302_s8  ;;  %p191_p0 = scmp.ne.s32.totalorder %s2227_s28, %s2223_s27 }
   0x9   : > { %p179_p1 = scmp.eq.s32.totalorder %s178_s10, 0  ;;  %p192_p2 = scmp.eq.s32.totalorder %s2298_s6, 1 }
   0xa   : > { %p197_p3 = scmp.ne.s32.totalorder %s2223_s27, %s2219_s26  ;;  %p198_p4 = scmp.eq.s32.totalorder %s1716_s30, 1 }
   0xb   : > { %s2313_s11 = scalar_select %p179_p1, %s2227_s28, %s181_s9  }
   0xc   : > { %p2315_p5 = por %p192_p2, %p191_p0  ;;  %p2319_p6 = por %p198_p4, %p197_p3 }
   0xd   : > { %p1719_p7 = scmp.ge.s32.totalorder %s2231_s29, 1  ;;  %p243_p8 = scmp.lt.s32.totalorder %s2231_s29, 3 }
   0xf   : > { %p244_p9 = pnand %p1719_p7, %p243_p8 }
  0x10   : > { %s1721_s14 = sshll.u32 (!%p244_p9), %s2298_s6, 7  ;;  %s272_s30 = sand.u32 (!%p244_p9), 1, %s2223_s27  }
  0x11   : > { %247 = sbr.rel (%p244_p9) target bundleno = 527 (0x20f), region = 48  ;;  %p276_p10 = scmp.lt.s32.totalorder (!%p244_p9), %s1721_s14, 255 }
  0x12   : > { %s1720_s9 = sshll.u32 (!%p244_p9), %s272_s30, 3  ;;  %s2024_s10 = sshll.u32 (!%p244_p9), %s2298_s6, 3 }
  0x13   : > { %s274_s16 = scalar_lea.vmem (!%p244_p9), [#allocation3], %s1720_s9  ;;  %s1642_s20 = scalar_lea.sflag (!%p244_p9), [#allocation4], %s272_s30 }
  0x14   : > { %s1654_s17 = sshll.u32 (!%p244_p9), %s274_s16, 4  ;;  %s2189_s24 = scalar_lea.hbm (!%p244_p9), %s2951_s7, 16  ;;  %s1655_s17 = int_to_ptr.vmem [resolvable:$true] %s1654_s17 }
  0x16   : > { %s3004_s14 = smov (!%p276_p10, %s1721_s14), 255  ;;  %vm769_vm0 = vcmask 261120   ;;  %vm2952_vm2 = vcmask 1040384   ;;  %vm1608_vm3 = vsmask.f32 256  ;;  %vm1610_vm4 = vcmask 1041409  }
  0x17   : > { %s1722_s15 = sshll.u32 %s3004_s14, 2  ;;  %vm1611_vm5 = vsmask.f32 1280  ;;  %vm2682_vm9 = vmand %vm2952_vm2, %vm1608_vm3  ;;  %vm1588_vm10 = vcmask 1042434   ;;  %vm1615_vm14 = vsmask.f32 2304 }
  0x18   : > { %s2329_s18 = scalar_lea.vmem %s2944_s0, %s1722_s15  ;;  %vm2690_vm11 = vmand %vm1610_vm4, %vm1611_vm5  ;;  %vm1618_vm2 = vcmask 1043459   ;;  %vm1619_vm5 = vsmask.f32 3328  ;;  %s1652_s15 = scalar_lea.hbm %s2951_s7, %s2024_s10 }
  0x19   : > { %v2034_v1 = vld [vmem:[%s2329_s18 + $0x38] sm:$0xff]  ;;  %v2033_v9 = vld [vmem:[%s2329_s18 + $0x30] sm:$0xff]  ;;  %v2032_v17 = vld [vmem:[%s2329_s18 + $0x28] sm:$0xff]  ;;  %s1656_s19 = sshll.u32 %s1652_s15, 4  ;;  %s1657_s19 = int_to_ptr.hbm [resolvable:$true] %s1656_s19 }
  0x1a   : > { %v2042_v2 = vld [vmem:[%s2329_s18 + $0x78] sm:$0xff]  ;;  %v798_v5 = vsel %vm769_vm0, %v2034_v1, 0  ;;  %v2041_v10 = vld [vmem:[%s2329_s18 + $0x70] sm:$0xff]  ;;  %v795_v13 = vsel %vm769_vm0, %v2033_v9, 0  ;;  %v2040_v18 = vld [vmem:[%s2329_s18 + $0x68] sm:$0xff]  ;;  %v792_v21 = vsel %vm769_vm0, %v2032_v17, 0 }
  0x1b   : > { %v2050_v3 = vld [vmem:[%s2329_s18 + $0xb8] sm:$0xff]  ;;  %v822_v6 = vsel %vm769_vm0, %v2042_v2, 0  ;;  %968 = vmatpush.bf16.xpose.msra.mxu0 %v798_v5  ;;  %v2049_v11 = vld [vmem:[%s2329_s18 + $0xb0] sm:$0xff]  ;;  %v819_v14 = vsel %vm769_vm0, %v2041_v10, 0  ;;  %v2048_v19 = vld [vmem:[%s2329_s18 + $0xa8] sm:$0xff]  ;;  %v816_v22 = vsel %vm769_vm0, %v2040_v18, 0 }
  0x1c   : > { %v2058_v4 = vld [vmem:[%s2329_s18 + $0xf8] sm:$0xff]  ;;  %v846_v7 = vsel %vm769_vm0, %v2050_v3, 0  ;;  %987 = vmatpush.bf16.xpose.msra.mxu1 %v822_v6  ;;  %v2057_v12 = vld [vmem:[%s2329_s18 + $0xf0] sm:$0xff]  ;;  %v843_v15 = vsel %vm769_vm0, %v2049_v11, 0  ;;  %v2056_v20 = vld [vmem:[%s2329_s18 + $0xe8] sm:$0xff]  ;;  %v840_v23 = vsel %vm769_vm0, %v2048_v19, 0 }
  0x1d   : > { %v870_v8 = vsel %vm769_vm0, %v2058_v4, 0  ;;  %1006 = vmatpush.bf16.xpose.msra.mxu2 %v846_v7  ;;  %v867_v16 = vsel %vm769_vm0, %v2057_v12, 0  ;;  %v864_v24 = vsel %vm769_vm0, %v2056_v20, 0  ;;  %v2031_v25 = vld [vmem:[%s2329_s18 + $0x20] sm:$0xff]  ;;  %v2030_v33 = vld [vmem:[%s2329_s18 + $0x18] sm:$0xff]  ;;  %v2029_v41 = vld [vmem:[%s2329_s18 + $0x10] sm:$0xff] }
  0x1e   : > { %1025 = vmatpush.bf16.xpose.msra.mxu3 %v870_v8  ;;  %v2039_v26 = vld [vmem:[%s2329_s18 + $0x60] sm:$0xff]  ;;  %v789_v29 = vsel %vm769_vm0, %v2031_v25, 0  ;;  %v2038_v34 = vld [vmem:[%s2329_s18 + $0x58] sm:$0xff]  ;;  %v786_v37 = vsel %vm769_vm0, %v2030_v33, 0  ;;  %v2037_v42 = vld [vmem:[%s2329_s18 + $0x50] sm:$0xff]  ;;  %v783_v45 = vsel %vm769_vm0, %v2029_v41, 0 }
  0x1f   : > { %v2047_v27 = vld [vmem:[%s2329_s18 + $0xa0] sm:$0xff]  ;;  %v813_v30 = vsel %vm769_vm0, %v2039_v26, 0  ;;  %v2046_v35 = vld [vmem:[%s2329_s18 + $0x98] sm:$0xff]  ;;  %v810_v38 = vsel %vm769_vm0, %v2038_v34, 0  ;;  %v2045_v43 = vld [vmem:[%s2329_s18 + $0x90] sm:$0xff]  ;;  %v807_v46 = vsel %vm769_vm0, %v2037_v42, 0 }
  0x20   : > { %v2055_v28 = vld [vmem:[%s2329_s18 + $0xe0] sm:$0xff]  ;;  %v837_v31 = vsel %vm769_vm0, %v2047_v27, 0  ;;  %v2054_v36 = vld [vmem:[%s2329_s18 + $0xd8] sm:$0xff]  ;;  %v834_v39 = vsel %vm769_vm0, %v2046_v35, 0  ;;  %v2053_v44 = vld [vmem:[%s2329_s18 + $0xd0] sm:$0xff]  ;;  %v831_v47 = vsel %vm769_vm0, %v2045_v43, 0 }
  0x21   : > { %v861_v32 = vsel %vm769_vm0, %v2055_v28, 0  ;;  %v858_v40 = vsel %vm769_vm0, %v2054_v36, 0  ;;  %v855_v48 = vsel %vm769_vm0, %v2053_v44, 0  ;;  %v2028_v49 = vld [vmem:[%s2329_s18 + $0x8] sm:$0xff]  ;;  %v2027_v57 = vld [vmem:[%s2329_s18] sm:$0xff]  ;;  %v2066_v61 = vld [vmem:[%s2329_s18 + $0x138] sm:$0xff] }
  0x22   : > { %v2036_v50 = vld [vmem:[%s2329_s18 + $0x48] sm:$0xff]  ;;  %v780_v53 = vsel %vm769_vm0, %v2028_v49, 0  ;;  %v2035_v58 = vld [vmem:[%s2329_s18 + $0x40] sm:$0xff]  ;;  %v2074_v62 = vld [vmem:[%s2329_s18 + $0x178] sm:$0xff]  ;;  %v2233_v1 = vmov 0   ;;  %v777_v2 = vsel %vm769_vm0, %v2027_v57, 0 }
  0x23   : > { %969 = vmatpush.bf16.xpose.msra.mxu0 %v795_v13  ;;  %v2044_v51 = vld [vmem:[%s2329_s18 + $0x88] sm:$0xff]  ;;  %v804_v54 = vsel %vm769_vm0, %v2036_v50, 0  ;;  %v2043_v59 = vld [vmem:[%s2329_s18 + $0x80] sm:$0xff]  ;;  %v2082_v63 = vld [vmem:[%s2329_s18 + $0x1b8] sm:$0xff]  ;;  %2134 = vset.pattern.permute.xlu0 %v2233_v1  ;;  %v801_v3 = vsel %vm769_vm0, %v2035_v58, 0  ;;  %v894_v6 = vsel %vm769_vm0, %v2066_v61, 0 }
  0x24   : > { %988 = vmatpush.bf16.xpose.msra.mxu1 %v819_v14  ;;  %v2052_v52 = vld [vmem:[%s2329_s18 + $0xc8] sm:$0xff]  ;;  %v828_v55 = vsel %vm769_vm0, %v2044_v51, 0  ;;  %v2051_v60 = vld [vmem:[%s2329_s18 + $0xc0] sm:$0xff]  ;;  %v2090_v0 = vld [vmem:[%s2329_s18 + $0x1f8] sm:$0xff]  ;;  %2135 = vset.pattern.permute.xlu1 %v2233_v1  ;;  %v825_v4 = vsel %vm769_vm0, %v2043_v59, 0  ;;  %v918_v7 = vsel %vm769_vm0, %v2074_v62, 0 }
  0x25   : > { %1007 = vmatpush.bf16.xpose.msra.mxu2 %v843_v15  ;;  %v852_v56 = vsel %vm769_vm0, %v2052_v52, 0  ;;  %2136 = vset.pattern.permute.xlu2 %v2233_v1  ;;  %v849_v5 = vsel %vm769_vm0, %v2051_v60, 0  ;;  %v942_v8 = vsel %vm769_vm0, %v2082_v63, 0  ;;  %v966_v9 = vsel %vm769_vm0, %v2090_v0, 0  ;;  %v2406_v10 = vld [vmem:[%s2945_s1] sm:$0xff]  ;;  %v2065_v11 = vld [vmem:[%s2329_s18 + $0x130] sm:$0xff] }
  0x26   : > { %1026 = vmatpush.bf16.xpose.msra.mxu3 %v867_v16  ;;  %v2073_v12 = vld [vmem:[%s2329_s18 + $0x170] sm:$0xff]  ;;  %v415_v14 = vld [vmem:[%s2946_s2] sm:$0xff]  ;;  %v891_v17 = vsel %vm769_vm0, %v2065_v11, 0  ;;  %v2080_v25 = vld [vmem:[%s2329_s18 + $0x1a8] sm:$0xff] }
  0x27   : > { %v417_v13 = vld [vmem:[%s2946_s2 + $0x10] sm:$0xff]  ;;  %421 = vperm.xlu1 %2135, %v415_v14   ;;  %v915_v18 = vsel %vm769_vm0, %v2073_v12, 0  ;;  %v2088_v26 = vld [vmem:[%s2329_s18 + $0x1e8] sm:$0xff]  ;;  %v2071_v33 = vld [vmem:[%s2329_s18 + $0x160] sm:$0xff] }
  0x28   : > { %v2081_v15 = vld [vmem:[%s2329_s18 + $0x1b0] sm:$0xff]  ;;  %431 = vperm.xlu0 %2134, %v417_v13   ;;  %v2079_v34 = vld [vmem:[%s2329_s18 + $0x1a0] sm:$0xff]  ;;  %v2070_v41 = vld [vmem:[%s2329_s18 + $0x158] sm:$0xff] }
  0x29   : > { %v2089_v16 = vld [vmem:[%s2329_s18 + $0x1f0] sm:$0xff]  ;;  %v939_v19 = vsel %vm769_vm0, %v2081_v15, 0  ;;  %v2087_v35 = vld [vmem:[%s2329_s18 + $0x1e0] sm:$0xff]  ;;  %v2078_v42 = vld [vmem:[%s2329_s18 + $0x198] sm:$0xff] }
  0x2a   : > { %v963_v20 = vsel %vm769_vm0, %v2089_v16, 0  ;;  %v2086_v43 = vld [vmem:[%s2329_s18 + $0x1d8] sm:$0xff]  ;;  %v2061_v49 = vld [vmem:[%s2329_s18 + $0x110] sm:$0xff]  ;;  %v2060_v57 = vld [vmem:[%s2329_s18 + $0x108] sm:$0xff] }
  0x2b   : > { %970 = vmatpush.bf16.xpose.msra.mxu0 %v792_v21  ;;  %v2064_v21 = vld [vmem:[%s2329_s18 + $0x128] sm:$0xff]  ;;  %v2069_v50 = vld [vmem:[%s2329_s18 + $0x150] sm:$0xff]  ;;  %v876_v61 = vsel %vm769_vm0, %v2060_v57, 0 }
  0x2c   : > { %989 = vmatpush.bf16.xpose.msra.mxu1 %v816_v22  ;;  %v2072_v22 = vld [vmem:[%s2329_s18 + $0x168] sm:$0xff]  ;;  %v888_v27 = vsel %vm769_vm0, %v2064_v21, 0  ;;  %v2077_v51 = vld [vmem:[%s2329_s18 + $0x190] sm:$0xff] }
  0x2d   : > { %1008 = vmatpush.bf16.xpose.msra.mxu2 %v840_v23  ;;  %v418_v23 = vld [vmem:[%s2946_s2 + $0x18] sm:$0xff]  ;;  %v912_v28 = vsel %vm769_vm0, %v2072_v22, 0  ;;  %v2085_v52 = vld [vmem:[%s2329_s18 + $0x1d0] sm:$0xff]  ;;  %v2068_v58 = vld [vmem:[%s2329_s18 + $0x148] sm:$0xff] }
  0x2e   : > { %1027 = vmatpush.bf16.xpose.msra.mxu3 %v864_v24  ;;  %v416_v24 = vld [vmem:[%s2946_s2 + $0x8] sm:$0xff]  ;;  %v900_v62 = vsel %vm769_vm0, %v2068_v58, 0 }
  0x2f   : > { %426 = vperm.xlu1 %2135, %v416_v24   ;;  %v2076_v59 = vld [vmem:[%s2329_s18 + $0x188] sm:$0xff] }
  0x30   : > { %436 = vperm.xlu0 %2134, %v418_v23   ;;  %v2084_v60 = vld [vmem:[%s2329_s18 + $0x1c8] sm:$0xff]  ;;  %v924_v63 = vsel %vm769_vm0, %v2076_v59, 0 }
  0x31   : > { %v948_v0 = vsel %vm769_vm0, %v2084_v60, 0  ;;  %v1319_v1 = vld [vmem:[%s2949_s5 + $0x8] sm:$0xff] }
  0x33   : > { %971 = vmatpush.bf16.xpose.msra.mxu0 %v789_v29  ;;  %v936_v29 = vsel %vm769_vm0, %v2080_v25, 0 }
  0x34   : > { %990 = vmatpush.bf16.xpose.msra.mxu1 %v813_v30  ;;  %v960_v30 = vsel %vm769_vm0, %v2088_v26, 0 }
  0x35   : > { %1009 = vmatpush.bf16.xpose.msra.mxu2 %v837_v31  ;;  %v2447_v31 = vld [vmem:[%s2945_s1 + $0x8] sm:$0xff] }
  0x36   : > { %1028 = vmatpush.bf16.xpose.msra.mxu3 %v861_v32  ;;  %v2063_v32 = vld [vmem:[%s2329_s18 + $0x120] sm:$0xff] }
  0x37   : > { %v885_v36 = vsel %vm769_vm0, %v2063_v32, 0  ;;  %1328 = vperm.xlu1 %2135, %v1319_v1  }
  0x3b   : > { %972 = vmatpush.bf16.xpose.msra.mxu0 %v786_v37  ;;  %v909_v37 = vsel %vm769_vm0, %v2071_v33, 0 }
  0x3c   : > { %991 = vmatpush.bf16.xpose.msra.mxu1 %v810_v38  ;;  %v933_v38 = vsel %vm769_vm0, %v2079_v34, 0 }
  0x3d   : > { %1010 = vmatpush.bf16.xpose.msra.mxu2 %v834_v39  ;;  %v957_v39 = vsel %vm769_vm0, %v2087_v35, 0 }
  0x3e   : > { %1029 = vmatpush.bf16.xpose.msra.mxu3 %v858_v40  ;;  %v2062_v40 = vld [vmem:[%s2329_s18 + $0x118] sm:$0xff] }
  0x3f   : > { %v882_v44 = vsel %vm769_vm0, %v2062_v40, 0 }
  0x43   : > { %973 = vmatpush.bf16.xpose.msra.mxu0 %v783_v45  ;;  %v906_v45 = vsel %vm769_vm0, %v2070_v41, 0 }
  0x44   : > { %992 = vmatpush.bf16.xpose.msra.mxu1 %v807_v46  ;;  %v930_v46 = vsel %vm769_vm0, %v2078_v42, 0 }
  0x45   : > { %1011 = vmatpush.bf16.xpose.msra.mxu2 %v831_v47  ;;  %v954_v47 = vsel %vm769_vm0, %v2086_v43, 0 }
  0x46   : > { %1030 = vmatpush.bf16.xpose.msra.mxu3 %v855_v48  ;;  %v1318_v48 = vld [vmem:[%s2949_s5] sm:$0xff] }
  0x47   : > { %1323 = vperm.xlu0 %2134, %v1318_v48  }
  0x4b   : > { %974 = vmatpush.bf16.xpose.msra.mxu0 %v780_v53  ;;  %v879_v53 = vsel %vm769_vm0, %v2061_v49, 0 }
  0x4c   : > { %993 = vmatpush.bf16.xpose.msra.mxu1 %v804_v54  ;;  %v903_v54 = vsel %vm769_vm0, %v2069_v50, 0 }
  0x4d   : > { %1012 = vmatpush.bf16.xpose.msra.mxu2 %v828_v55  ;;  %v927_v55 = vsel %vm769_vm0, %v2077_v51, 0 }
  0x4e   : > { %1031 = vmatpush.bf16.xpose.msra.mxu3 %v852_v56  ;;  %v951_v56 = vsel %vm769_vm0, %v2085_v52, 0 }
  0x53   : > { %975 = vmatpush.bf16.xpose.msra.mxu0 %v777_v2  ;;  %v2059_v2 = vld [vmem:[%s2329_s18 + $0x100] sm:$0xff] }
  0x54   : > { %994 = vmatpush.bf16.xpose.msra.mxu1 %v801_v3  ;;  %v2067_v3 = vld [vmem:[%s2329_s18 + $0x140] sm:$0xff] }
  0x55   : > { %1013 = vmatpush.bf16.xpose.msra.mxu2 %v825_v4  ;;  %v2075_v4 = vld [vmem:[%s2329_s18 + $0x180] sm:$0xff] }
  0x56   : > { %1032 = vmatpush.bf16.xpose.msra.mxu3 %v849_v5  ;;  %v2083_v5 = vld [vmem:[%s2329_s18 + $0x1c0] sm:$0xff]  ;;  %s2183_s18 = sshra.s32 %s1657_s19, 4  ;;  %s2184_s18 = int_to_ptr.hbm [resolvable:$true] %s2183_s18 }
  0x57   : > { %s2185_s21 = scalar_lea.hbm %s2184_s18, 8  ;;  %p2190_p0 = scmp.lt.s32.totalorder %s2184_s18, %s2951_s7 }
  0x58   : > { %p2186_p11 = scmp.ne.s32.totalorder %s2184_s18, %s2185_s21  ;;  %p2191_p1 = scmp.lt.s32.totalorder %s2189_s24, %s2185_s21 }
  0x5a   : > { %1987 = vmatmul.msk.bf16.vlgmr.msra.gmra.mxu0 %vm769_vm0, %v2406_v10  ;;  %p2187_p12 = pnand %p2186_p11, %p2315_p5  ;;  %p2192_p2 = por %p2191_p1, %p2190_p0 }
  0x5b   : > { %1044 = vmatpush.bf16.xpose.msrb.mxu0 %v894_v6  ;;  %1989 = vmatmul.msk.bf16.vlgmr.msra.gmra.mxu1 %vm769_vm0, %v2406_v10  ;;  %v873_v6 = vsel %vm769_vm0, %v2059_v2, 0 }
  0x5c   : > { %1063 = vmatpush.bf16.xpose.msrb.mxu1 %v918_v7  ;;  %1991 = vmatmul.msk.bf16.vlgmr.msra.gmra.mxu2 %vm769_vm0, %v2406_v10  ;;  %v897_v7 = vsel %vm769_vm0, %v2067_v3, 0  ;;  %p2188_p13 = pneg %p2187_p12 }
  0x5d   : > { %1082 = vmatpush.bf16.xpose.msrb.mxu2 %v942_v8  ;;  %1993 = vmatmul.msk.bf16.vlgmr.msra.gmra.mxu3 %vm769_vm0, %v2406_v10  ;;  %v921_v8 = vsel %vm769_vm0, %v2075_v4, 0 }
  0x5e   : > { %1101 = vmatpush.bf16.xpose.msrb.mxu3 %v966_v9  ;;  %v945_v9 = vsel %vm769_vm0, %v2083_v5, 0  ;;  %p2193_p3 = pnand %p2192_p2, %p2188_p13 }
  0x63   : > { %1045 = vmatpush.bf16.xpose.msrb.mxu0 %v891_v17 }
  0x64   : > { %1064 = vmatpush.bf16.xpose.msrb.mxu1 %v915_v18 }
  0x65   : > { %1083 = vmatpush.bf16.xpose.msrb.mxu2 %v939_v19 }
  0x66   : > { %1102 = vmatpush.bf16.xpose.msrb.mxu3 %v963_v20 }
  0x6a   : > { %1988 = vmatmul.msk.bf16.gmra.mxu0 %vm769_vm0, %v2447_v31 }
  0x6b   : > { %1046 = vmatpush.bf16.xpose.msrb.mxu0 %v888_v27  ;;  %1990 = vmatmul.msk.bf16.gmra.mxu1 %vm769_vm0, %v2447_v31 }
  0x6c   : > { %1065 = vmatpush.bf16.xpose.msrb.mxu1 %v912_v28  ;;  %1992 = vmatmul.msk.bf16.gmra.mxu2 %vm769_vm0, %v2447_v31 }
  0x6d   : > { %1084 = vmatpush.bf16.xpose.msrb.mxu2 %v936_v29  ;;  %1994 = vmatmul.msk.bf16.gmra.mxu3 %vm769_vm0, %v2447_v31 }
  0x6e   : > { %1103 = vmatpush.bf16.xpose.msrb.mxu3 %v960_v30 }
  0x73   : > { %1047 = vmatpush.bf16.xpose.msrb.mxu0 %v885_v36 }
  0x74   : > { %1066 = vmatpush.bf16.xpose.msrb.mxu1 %v909_v37 }
  0x75   : > { %1085 = vmatpush.bf16.xpose.msrb.mxu2 %v933_v38 }
  0x76   : > { %1104 = vmatpush.bf16.xpose.msrb.mxu3 %v957_v39 }
  0x7b   : > { %1048 = vmatpush.bf16.xpose.msrb.mxu0 %v882_v44 }
  0x7c   : > { %1067 = vmatpush.bf16.xpose.msrb.mxu1 %v906_v45 }
  0x7d   : > { %1086 = vmatpush.bf16.xpose.msrb.mxu2 %v930_v46 }
  0x7e   : > { %1105 = vmatpush.bf16.xpose.msrb.mxu3 %v954_v47 }
  0x83   : > { %1049 = vmatpush.bf16.xpose.msrb.mxu0 %v879_v53 }
  0x84   : > { %1068 = vmatpush.bf16.xpose.msrb.mxu1 %v903_v54 }
  0x85   : > { %1087 = vmatpush.bf16.xpose.msrb.mxu2 %v927_v55 }
  0x86   : > { %1106 = vmatpush.bf16.xpose.msrb.mxu3 %v951_v56 }
  0x8b   : > { %1050 = vmatpush.bf16.xpose.msrb.mxu0 %v876_v61 }
  0x8c   : > { %1069 = vmatpush.bf16.xpose.msrb.mxu1 %v900_v62  ;;  %v2546_v62 = vld [vmem:[%s2947_s3] sm:$0xff] }
  0x8d   : > { %1088 = vmatpush.bf16.xpose.msrb.mxu2 %v924_v63 }
  0x8e   : > { %1107 = vmatpush.bf16.xpose.msrb.mxu3 %v948_v0 }
  0x93   : > { %1051 = vmatpush.bf16.xpose.msrb.mxu0 %v873_v6 }
  0x94   : > { %1070 = vmatpush.bf16.xpose.msrb.mxu1 %v897_v7  ;;  %v1154_v7 = vld [vmem:[%s2948_s4] sm:$0xff] }
  0x95   : > { %1089 = vmatpush.bf16.xpose.msrb.mxu2 %v921_v8  ;;  %1174 = vperm.xlu2 %2136, %v1154_v7   ;;  %v1155_v8 = vld [vmem:[%s2948_s4 + $0x8] sm:$0xff] }
  0x96   : > { %1108 = vmatpush.bf16.xpose.msrb.mxu3 %v945_v9 }
  0x99   : > { %v2519_v17 = vpop.permute.xlu1 %421 }
  0x9a   : > { %1995 = vmatmul.msk.bf16.vlgmr.msrb.gmra.mxu0 %vm769_vm0, %v2406_v10 }
  0x9b   : > { %1997 = vmatmul.msk.bf16.vlgmr.msrb.gmra.mxu1 %vm769_vm0, %v2406_v10 }
  0x9c   : > { %1999 = vmatmul.msk.bf16.vlgmr.msrb.gmra.mxu2 %vm769_vm0, %v2406_v10 }
  0x9d   : > { %2001 = vmatmul.msk.bf16.vlgmr.msrb.gmra.mxu3 %vm769_vm0, %v2406_v10  ;;  %v2521_v10 = vpop.permute.xlu0 %431  ;;  %1179 = vperm.xlu2 %2136, %v1155_v8  }
  0xa1   : > { %v2523_v22 = vpop.permute.xlu1 %426 }
  0xa5   : > { %v2527_v25 = vpop.permute.xlu0 %436 }
  0xaa   : > { %1996 = vmatmul.msk.bf16.gmra.mxu0 %vm769_vm0, %v2447_v31 }
  0xab   : > { %1998 = vmatmul.msk.bf16.gmra.mxu1 %vm769_vm0, %v2447_v31 }
  0xac   : > { %2000 = vmatmul.msk.bf16.gmra.mxu2 %vm769_vm0, %v2447_v31 }
  0xad   : > { %2002 = vmatmul.msk.bf16.gmra.mxu3 %vm769_vm0, %v2447_v31 }
  0xd7   : > { %v977_v11 = vpop.f32.mrf.mxu0 }
  0xd8   : > { %v996_v12 = vpop.f32.mrf.mxu1  ;;  %v978_v26 = vadd.f32 %v977_v11, %v2519_v17 }
  0xd9   : > { %v997_v30 = vadd.f32 %v996_v12, %v2519_v17 }
  0xda   : > { %v1120_v38 = vmax.f32 %v978_v26, 0.0 }
  0xdb   : > { %v1121_v42 = vmax.f32 %v997_v30, 0.0 }
  0xdf   : > { %v1015_v13 = vpop.f32.mrf.mxu2  ;;  %v979_v15 = vpop.f32.mrf.mxu0 }
  0xe0   : > { %v1034_v14 = vpop.f32.mrf.mxu3  ;;  %v998_v16 = vpop.f32.mrf.mxu1  ;;  %v980_v27 = vadd.f32 %v979_v15, %v2523_v22  ;;  %v1016_v49 = vadd.f32 %v1015_v13, %v2519_v17 }
  0xe1   : > { %v999_v31 = vadd.f32 %v998_v16, %v2523_v22  ;;  %v1035_v50 = vadd.f32 %v1034_v14, %v2519_v17  ;;  %v1320_v16 = vld [vmem:[#allocation2] sm:$0x1] }
  0xe2   : > { %v1128_v39 = vmax.f32 %v980_v27, 0.0  ;;  %v1122_v63 = vmax.f32 %v1016_v49, 0.0  ;;  %1405 = vperm.xlu2 %2136, %v1320_v16  }
  0xe3   : > { %v1129_v43 = vmax.f32 %v999_v31, 0.0  ;;  %v1123_v0 = vmax.f32 %v1035_v50, 0.0 }
  0xe4   : > { %v1156_v48 = vpack.c.bf16 %v1128_v39, %v1120_v38 }
  0xe5   : > { %v1157_v53 = vpack.c.bf16 %v1129_v43, %v1121_v42 }
  0xe7   : > { %v1017_v18 = vpop.f32.mrf.mxu2  ;;  %v982_v20 = vpop.f32.mrf.mxu0 }
  0xe8   : > { %v1036_v19 = vpop.f32.mrf.mxu3  ;;  %v1001_v21 = vpop.f32.mrf.mxu1  ;;  %v983_v23 = vadd.f32 %v982_v20, %v2521_v10  ;;  %v1018_v54 = vadd.f32 %v1017_v18, %v2523_v22 }
  0xe9   : > { %v1002_v24 = vadd.f32 %v1001_v21, %v2521_v10  ;;  %v1037_v55 = vadd.f32 %v1036_v19, %v2523_v22 }
  0xea   : > { %v1136_v34 = vmax.f32 %v983_v23, 0.0  ;;  %v1130_v3 = vmax.f32 %v1018_v54, 0.0 }
  0xeb   : > { %v1137_v35 = vmax.f32 %v1002_v24, 0.0  ;;  %v1131_v4 = vmax.f32 %v1037_v55, 0.0 }
  0xec   : > { %v1158_v5 = vpack.c.bf16 %v1130_v3, %v1122_v63 }
  0xed   : > { %v1159_v6 = vpack.c.bf16 %v1131_v4, %v1123_v0 }
  0xef   : > { %v1020_v28 = vpop.f32.mrf.mxu2  ;;  %v984_v32 = vpop.f32.mrf.mxu0 }
  0xf0   : > { %v1039_v29 = vpop.f32.mrf.mxu3  ;;  %v1003_v33 = vpop.f32.mrf.mxu1  ;;  %v985_v36 = vadd.f32 %v984_v32, %v2527_v25  ;;  %v1021_v44 = vadd.f32 %v1020_v28, %v2521_v10 }
  0xf1   : > { %v1004_v37 = vadd.f32 %v1003_v33, %v2527_v25  ;;  %v1040_v45 = vadd.f32 %v1039_v29, %v2521_v10  ;;  %v2586_v3 = vpop.permute.xlu2 %1174 }
  0xf2   : > { %v1144_v40 = vmax.f32 %v985_v36, 0.0  ;;  %v1138_v56 = vmax.f32 %v1021_v44, 0.0 }
  0xf3   : > { %v1145_v41 = vmax.f32 %v1004_v37, 0.0  ;;  %v1139_v57 = vmax.f32 %v1040_v45, 0.0 }
  0xf4   : > { %v1164_v46 = vpack.c.bf16 %v1144_v40, %v1136_v34 }
  0xf5   : > { %v1165_v47 = vpack.c.bf16 %v1145_v41, %v1137_v35 }
  0xf6   : > { %1196 = vmatpush.bf16.msra.mxu0 %v1164_v46 }
  0xf7   : > { %v1022_v51 = vpop.f32.mrf.mxu2  ;;  %1210 = vmatpush.bf16.msra.mxu1 %v1165_v47 }
  0xf8   : > { %v1041_v52 = vpop.f32.mrf.mxu3  ;;  %v1023_v58 = vadd.f32 %v1022_v51, %v2527_v25 }
  0xf9   : > { %v1042_v59 = vadd.f32 %v1041_v52, %v2527_v25  ;;  %v2588_v8 = vpop.permute.xlu2 %1179 }
  0xfa   : > { %v1146_v60 = vmax.f32 %v1023_v58, 0.0  ;;  %1197 = vmatpush.bf16.msra.mxu0 %v1156_v48 }
  0xfb   : > { %v1147_v61 = vmax.f32 %v1042_v59, 0.0  ;;  %1211 = vmatpush.bf16.msra.mxu1 %v1157_v53 }
  0xfc   : > { %v1166_v1 = vpack.c.bf16 %v1146_v60, %v1138_v56 }
  0xfd   : > { %v1167_v2 = vpack.c.bf16 %v1147_v61, %v1139_v57  ;;  %2007 = vmatmul.msk.bf16.vlgmr.msra.gmra.mxu0 %vm769_vm0, %v2546_v62 }
  0xfe   : > { %1224 = vmatpush.bf16.msra.mxu2 %v1166_v1  ;;  %2008 = vmatmul.msk.bf16.vlgmr.msra.gmra.mxu1 %vm769_vm0, %v2546_v62 }
  0xff   : > { %1238 = vmatpush.bf16.msra.mxu3 %v1167_v2 }
 0x102   : > { %1225 = vmatpush.bf16.msra.mxu2 %v1158_v5 }
 0x103   : > { %1239 = vmatpush.bf16.msra.mxu3 %v1159_v6 }
 0x105   : > { %2009 = vmatmul.msk.bf16.vlgmr.msra.gmra.mxu2 %vm769_vm0, %v2546_v62 }
 0x106   : > { %2010 = vmatmul.msk.bf16.vlgmr.msra.gmra.mxu3 %vm769_vm0, %v2546_v62 }
 0x117   : > { %v1053_v9 = vpop.f32.mrf.mxu0 }
 0x118   : > { %v1072_v11 = vpop.f32.mrf.mxu1  ;;  %v1054_v28 = vadd.f32 %v1053_v9, %v2519_v17 }
 0x119   : > { %v1073_v29 = vadd.f32 %v1072_v11, %v2519_v17 }
 0x11a   : > { %v1124_v40 = vmax.f32 %v1054_v28, 0.0 }
 0x11b   : > { %v1125_v41 = vmax.f32 %v1073_v29, 0.0  ;;  %v2600_v29 = vpop.permute.xlu0 %1323 }
 0x11f   : > { %v1091_v12 = vpop.f32.mrf.mxu2  ;;  %v1055_v14 = vpop.f32.mrf.mxu0 }
 0x120   : > { %v1110_v13 = vpop.f32.mrf.mxu3  ;;  %v1074_v15 = vpop.f32.mrf.mxu1  ;;  %v1056_v32 = vadd.f32 %v1055_v14, %v2523_v22  ;;  %v1092_v54 = vadd.f32 %v1091_v12, %v2519_v17 }
 0x121   : > { %v1075_v33 = vadd.f32 %v1074_v15, %v2523_v22  ;;  %v1111_v55 = vadd.f32 %v1110_v13, %v2519_v17 }
 0x122   : > { %v1132_v42 = vmax.f32 %v1056_v32, 0.0  ;;  %v1126_v1 = vmax.f32 %v1092_v54, 0.0 }
 0x123   : > { %v1133_v43 = vmax.f32 %v1075_v33, 0.0  ;;  %v1127_v2 = vmax.f32 %v1111_v55, 0.0 }
 0x124   : > { %v1160_v56 = vpack.c.bf16 %v1132_v42, %v1124_v40 }
 0x125   : > { %v1161_v57 = vpack.c.bf16 %v1133_v43, %v1125_v41 }
 0x127   : > { %v1093_v18 = vpop.f32.mrf.mxu2  ;;  %v1058_v20 = vpop.f32.mrf.mxu0 }
 0x128   : > { %v1112_v19 = vpop.f32.mrf.mxu3  ;;  %v1077_v21 = vpop.f32.mrf.mxu1  ;;  %v1059_v23 = vadd.f32 %v1058_v20, %v2521_v10  ;;  %v1094_v50 = vadd.f32 %v1093_v18, %v2523_v22 }
 0x129   : > { %v1078_v24 = vadd.f32 %v1077_v21, %v2521_v10  ;;  %v1113_v51 = vadd.f32 %v1112_v19, %v2523_v22 }
 0x12a   : > { %v1140_v36 = vmax.f32 %v1059_v23, 0.0  ;;  %v1134_v61 = vmax.f32 %v1094_v50, 0.0  ;;  %v2596_v23 = vpop.permute.xlu1 %1328 }
 0x12b   : > { %v1141_v37 = vmax.f32 %v1078_v24, 0.0  ;;  %v1135_v63 = vmax.f32 %v1113_v51, 0.0 }
 0x12c   : > { %v1162_v17 = vpack.c.bf16 %v1134_v61, %v1126_v1 }
 0x12f   : > { %v1096_v26 = vpop.f32.mrf.mxu2  ;;  %v1060_v30 = vpop.f32.mrf.mxu0 }
 0x130   : > { %v1115_v27 = vpop.f32.mrf.mxu3  ;;  %v1079_v31 = vpop.f32.mrf.mxu1  ;;  %v1061_v34 = vadd.f32 %v1060_v30, %v2527_v25  ;;  %v1097_v46 = vadd.f32 %v1096_v26, %v2521_v10 }
 0x131   : > { %v1080_v35 = vadd.f32 %v1079_v31, %v2527_v25  ;;  %v1116_v47 = vadd.f32 %v1115_v27, %v2521_v10 }
 0x132   : > { %v1148_v38 = vmax.f32 %v1061_v34, 0.0  ;;  %v1142_v58 = vmax.f32 %v1097_v46, 0.0 }
 0x133   : > { %v1149_v39 = vmax.f32 %v1080_v35, 0.0  ;;  %v1143_v10 = vmax.f32 %v1116_v47, 0.0 }
 0x134   : > { %v1168_v44 = vpack.c.bf16 %v1148_v38, %v1140_v36 }
 0x135   : > { %v1169_v45 = vpack.c.bf16 %v1149_v39, %v1141_v37 }
 0x136   : > { %1252 = vmatpush.bf16.msrb.mxu0 %v1168_v44 }
 0x137   : > { %v1098_v48 = vpop.f32.mrf.mxu2  ;;  %1266 = vmatpush.bf16.msrb.mxu1 %v1169_v45 }
 0x138   : > { %v1117_v49 = vpop.f32.mrf.mxu3  ;;  %v1099_v52 = vadd.f32 %v1098_v48, %v2527_v25 }
 0x139   : > { %v1118_v53 = vadd.f32 %v1117_v49, %v2527_v25  ;;  %v1163_v25 = vpack.c.bf16 %v1135_v63, %v1127_v2 }
 0x13a   : > { %v1150_v59 = vmax.f32 %v1099_v52, 0.0  ;;  %1253 = vmatpush.bf16.msrb.mxu0 %v1160_v56 }
 0x13b   : > { %v1151_v60 = vmax.f32 %v1118_v53, 0.0  ;;  %1267 = vmatpush.bf16.msrb.mxu1 %v1161_v57 }
 0x13c   : > { %v1170_v0 = vpack.c.bf16 %v1150_v59, %v1142_v58  ;;  %v1406_v61 = vpop.permute.xlu2 %1405 }
 0x13d   : > { %v1171_v22 = vpack.c.bf16 %v1151_v60, %v1143_v10  ;;  %2011 = vmatmul.msk.bf16.vlgmr.msrb.gmra.mxu0 %vm769_vm0, %v2546_v62  ;;  %v2610_v2 = vperm.slane %v1406_v61, 0 }
 0x13e   : > { %1280 = vmatpush.bf16.msrb.mxu2 %v1170_v0  ;;  %2012 = vmatmul.msk.bf16.vlgmr.msrb.gmra.mxu1 %vm769_vm0, %v2546_v62 }
 0x13f   : > { %1294 = vmatpush.bf16.msrb.mxu3 %v1171_v22 }
 0x142   : > { %1281 = vmatpush.bf16.msrb.mxu2 %v1162_v17 }
 0x143   : > { %1295 = vmatpush.bf16.msrb.mxu3 %v1163_v25 }
 0x145   : > { %2013 = vmatmul.msk.bf16.vlgmr.msrb.gmra.mxu2 %vm769_vm0, %v2546_v62 }
 0x146   : > { %2014 = vmatmul.msk.bf16.vlgmr.msrb.gmra.mxu3 %vm769_vm0, %v2546_v62 }
 0x17a   : > { %v1199_v4 = vpop.f32.mrf.mxu0 }
 0x17b   : > { %v1213_v5 = vpop.f32.mrf.mxu1  ;;  %v1200_v13 = vadd.f32 %v1199_v4, %v2586_v3 }
 0x17c   : > { %v1214_v19 = vadd.f32 %v1213_v5, %v2586_v3 }
 0x17d   : > { %v1302_v20 = vmax.f32 %v1200_v13, 0.0 }
 0x17e   : > { %v1303_v30 = vmax.f32 %v1214_v19, 0.0 }
 0x17f   : > { %v1331_v32 = vmul.f32 %v2600_v29, %v1302_v20 }
 0x180   : > { %v1332_v38 = vmul.f32 %v2600_v29, %v1303_v30 }
 0x182   : > { %v1201_v9 = vpop.f32.mrf.mxu0 }
 0x183   : > { %v1202_v11 = vadd.f32 %v1201_v9, %v2588_v8  ;;  %v1215_v12 = vpop.f32.mrf.mxu1 }
 0x184   : > { %v1216_v15 = vadd.f32 %v1215_v12, %v2588_v8 }
 0x185   : > { %v1310_v16 = vmax.f32 %v1202_v11, 0.0 }
 0x186   : > { %v1311_v24 = vmax.f32 %v1216_v15, 0.0 }
 0x187   : > { %v1339_v27 = vmul.f32 %v2596_v23, %v1310_v16 }
 0x188   : > { %v1227_v6 = vpop.f32.mrf.mxu2  ;;  %v1340_v34 = vmul.f32 %v2596_v23, %v1311_v24 }
 0x189   : > { %v1241_v7 = vpop.f32.mrf.mxu3  ;;  %v1228_v21 = vadd.f32 %v1227_v6, %v2586_v3  ;;  %v1347_v36 = vadd.f32 %v1339_v27, %v1331_v32 }
 0x18a   : > { %v1242_v31 = vadd.f32 %v1241_v7, %v2586_v3  ;;  %v1354_v41 = vadd.f32 %v1340_v34, %v1332_v38 }
 0x18b   : > { %v1304_v33 = vmax.f32 %v1228_v21, 0.0  ;;  %v1348_v43 = vrot.slane %v1347_v36, 4 }
 0x18c   : > { %v1305_v39 = vmax.f32 %v1242_v31, 0.0  ;;  %v1355_v46 = vrot.slane %v1354_v41, 4 }
 0x18d   : > { %v1333_v40 = vmul.f32 %v2600_v29, %v1304_v33  ;;  %v1349_v48 = vadd.f32 %v1348_v43, %v1347_v36 }
 0x18e   : > { %v1334_v45 = vmul.f32 %v2600_v29, %v1305_v39  ;;  %v1356_v50 = vadd.f32 %v1355_v46, %v1354_v41 }
 0x18f   : > { %v1350_v52 = vrot.slane %v1349_v48, 2 }
 0x190   : > { %v1229_v14 = vpop.f32.mrf.mxu2  ;;  %v1357_v54 = vrot.slane %v1356_v50, 2 }
 0x191   : > { %v1230_v62 = vadd.f32 %v1229_v14, %v2588_v8  ;;  %v1243_v18 = vpop.f32.mrf.mxu3  ;;  %v1351_v56 = vadd.f32 %v1350_v52, %v1349_v48 }
 0x192   : > { %v1244_v26 = vadd.f32 %v1243_v18, %v2588_v8  ;;  %v1358_v58 = vadd.f32 %v1357_v54, %v1356_v50 }
 0x193   : > { %v1312_v28 = vmax.f32 %v1230_v62, 0.0  ;;  %v1352_v59 = vrot.slane %v1351_v56, 1 }
 0x194   : > { %v1313_v35 = vmax.f32 %v1244_v26, 0.0  ;;  %v1359_v63 = vrot.slane %v1358_v58, 1 }
 0x195   : > { %v1341_v37 = vmul.f32 %v2596_v23, %v1312_v28  ;;  %v1353_v22 = vadd.f32 %v1352_v59, %v1351_v56 }
 0x196   : > { %v1342_v42 = vmul.f32 %v2596_v23, %v1313_v35  ;;  %v1360_v17 = vadd.f32 %v1359_v63, %v1358_v58 }
 0x197   : > { %v1361_v44 = vadd.f32 %v1341_v37, %v1333_v40  ;;  %v1409_v5 = vadd.f32 %v2610_v2, %v1353_v22 }
 0x198   : > { %v1368_v47 = vadd.f32 %v1342_v42, %v1334_v45  ;;  %v1410_v11 = vadd.f32 %v2610_v2, %v1360_v17 }
 0x199   : > { %v1362_v49 = vrot.slane %v1361_v44, 4  ;;  %v2015_v13 = vmul.f32 -1.442695, %v1409_v5 }
 0x19a   : > { %v1369_v51 = vrot.slane %v1368_v47, 4  ;;  %v2016_v62 = vmul.f32 -1.442695, %v1410_v11 }
 0x19b   : > { %v1363_v53 = vadd.f32 %v1362_v49, %v1361_v44  ;;  %2137 = vpow2.f32 %v2015_v13 }
 0x19c   : > { %v1370_v55 = vadd.f32 %v1369_v51, %v1368_v47  ;;  %2139 = vpow2.f32 %v2016_v62 }
 0x19d   : > { %v1364_v57 = vrot.slane %v1363_v53, 2 }
 0x19e   : > { %v1371_v10 = vrot.slane %v1370_v55, 2 }
 0x19f   : > { %v1365_v60 = vadd.f32 %v1364_v57, %v1363_v53 }
 0x1a0   : > { %v1372_v0 = vadd.f32 %v1371_v10, %v1370_v55 }
 0x1a1   : > { %v1366_v1 = vrot.slane %v1365_v60, 1  ;;  %v2138_v38 = vpop.eup %2137 }
 0x1a2   : > { %v1373_v25 = vrot.slane %v1372_v0, 1  ;;  %v2140_v43 = vpop.eup %2139  ;;  %v2626_v47 = vadd.f32 1.0, %v2138_v38 }
 0x1a3   : > { %v1367_v4 = vadd.f32 %v1366_v1, %v1365_v60  ;;  %v2628_v54 = vadd.f32 1.0, %v2140_v43 }
 0x1a4   : > { %v1374_v9 = vadd.f32 %v1373_v25, %v1372_v0  ;;  %vm1454_vm1 = vweird.f32 %v2626_v47 }
 0x1a5   : > { %v1411_v12 = vadd.f32 %v2610_v2, %v1367_v4  ;;  %vm1469_vm7 = vweird.f32 %v2628_v54 }
 0x1a6   : > { %v1412_v16 = vadd.f32 %v2610_v2, %v1374_v9 }
 0x1a7   : > { %v2017_v18 = vmul.f32 -1.442695, %v1411_v12 }
 0x1a8   : > { %v2018_v28 = vmul.f32 -1.442695, %v1412_v16 }
 0x1a9   : > { %2141 = vpow2.f32 %v2017_v18 }
 0x1aa   : > { %2143 = vpow2.f32 %v2018_v28 }
 0x1ab   : > { %2145 = vrcp.f32 %v2626_v47 }
 0x1ac   : > { %2147 = vrcp.f32 %v2628_v54 }
 0x1af   : > { %v2142_v46 = vpop.eup %2141 }
 0x1b0   : > { %v2144_v55 = vpop.eup %2143  ;;  %v2632_v10 = vadd.f32 1.0, %v2142_v46 }
 0x1b1   : > { %v2635_v0 = vadd.f32 1.0, %v2144_v55  ;;  %v2643_v11 = vpop.eup %2145 }
 0x1b2   : > { %2149 = vrcp.f32 %v2632_v10  ;;  %v1450_v28 = vmul.f32 %v2643_v11, %v2626_v47  ;;  %vm1455_vm6 = vweird.f32 %v2643_v11  ;;  %vm1484_vm13 = vweird.f32 %v2632_v10 }
 0x1b3   : > { %2151 = vrcp.f32 %v2635_v0  ;;  %vm2701_vm12 = vmor %vm1454_vm1, %vm1455_vm6  ;;  %vm1499_vm3 = vweird.f32 %v2635_v0 }
 0x1ba   : > { %v1255_v6 = vpop.f32.mrf.mxu0 }
 0x1bb   : > { %v1269_v7 = vpop.f32.mrf.mxu1  ;;  %v1256_v14 = vadd.f32 %v1255_v6, %v2586_v3 }
 0x1bc   : > { %v1270_v15 = vadd.f32 %v1269_v7, %v2586_v3 }
 0x1bd   : > { %v1306_v21 = vmax.f32 %v1256_v14, 0.0 }
 0x1be   : > { %v1307_v24 = vmax.f32 %v1270_v15, 0.0  ;;  %v2648_v15 = vpop.eup %2147 }
 0x1bf   : > { %v1335_v34 = vmul.f32 %v2600_v29, %v1306_v21  ;;  %vm1470_vm8 = vweird.f32 %v2648_v15 }
 0x1c0   : > { %v1336_v35 = vmul.f32 %v2600_v29, %v1307_v24  ;;  %vm2715_vm15 = vmor %vm1469_vm7, %vm1470_vm8 }
 0x1c1   : > { %vm2744_vm7 = vmand %vm1588_vm10, %vm1615_vm14 }
 0x1c2   : > { %v1257_v19 = vpop.f32.mrf.mxu0 }
 0x1c3   : > { %v1271_v20 = vpop.f32.mrf.mxu1  ;;  %v1258_v26 = vadd.f32 %v1257_v19, %v2588_v8  ;;  %v2650_v19 = vpop.eup %2149 }
 0x1c4   : > { %v1272_v27 = vadd.f32 %v1271_v20, %v2588_v8  ;;  %v2652_v24 = vpop.eup %2151  ;;  %vm1485_vm0 = vweird.f32 %v2650_v19 }
 0x1c5   : > { %v1314_v30 = vmax.f32 %v1258_v26, 0.0  ;;  %vm1500_vm4 = vweird.f32 %v2652_v24  ;;  %vm2754_vm8 = vmor %vm1484_vm13, %vm1485_vm0 }
 0x1c6   : > { %v1315_v31 = vmax.f32 %v1272_v27, 0.0  ;;  %vm2767_vm14 = vmor %vm1499_vm3, %vm1500_vm4 }
 0x1c7   : > { %v1343_v36 = vmul.f32 %v2596_v23, %v1314_v30  ;;  %vm2974_vm13 = vmor %vm2690_vm11, %vm2682_vm9  ;;  %vm1623_vm11 = vsmask.f32 4352 }
 0x1c8   : > { %v1283_v32 = vpop.f32.mrf.mxu2  ;;  %v1344_v37 = vmul.f32 %v2596_v23, %v1315_v31  ;;  %vm2784_vm0 = vmor %vm2744_vm7, %vm2974_vm13  ;;  %vm1626_vm13 = vcmask 1045509  }
 0x1c9   : > { %v1297_v33 = vpop.f32.mrf.mxu3  ;;  %v1375_v39 = vadd.f32 %v1343_v36, %v1335_v34  ;;  %v1284_v41 = vadd.f32 %v1283_v32, %v2586_v3  ;;  %v1480_v32 = vmul.f32 %v2650_v19, %v2632_v10  ;;  %v1495_v34 = vmul.f32 %v2652_v24, %v2635_v0  ;;  %vm2794_vm4 = vmand %vm1618_vm2, %vm1619_vm5 }
 0x1ca   : > { %v1382_v40 = vadd.f32 %v1344_v37, %v1336_v35  ;;  %v1298_v42 = vadd.f32 %v1297_v33, %v2586_v3  ;;  %v1465_v33 = vmul.f32 %v2648_v15, %v2628_v54 }
 0x1cb   : > { %v1376_v44 = vrot.slane %v1375_v39, 4  ;;  %v1308_v50 = vmax.f32 %v1284_v41, 0.0 }
 0x1cc   : > { %v1383_v45 = vrot.slane %v1382_v40, 4  ;;  %v1309_v51 = vmax.f32 %v1298_v42, 0.0  ;;  %v1466_v46 = vsub.f32 1.0, %v1465_v33 }
 0x1cd   : > { %v1377_v48 = vadd.f32 %v1376_v44, %v1375_v39  ;;  %v1337_v22 = vmul.f32 %v2600_v29, %v1308_v50  ;;  %v1481_v44 = vsub.f32 1.0, %v1480_v32 }
 0x1ce   : > { %v1384_v49 = vadd.f32 %v1383_v45, %v1382_v40  ;;  %v1338_v1 = vmul.f32 %v2600_v29, %v1309_v51  ;;  %v1451_v40 = vsub.f32 1.0, %v1450_v28  ;;  %v1460_v45 = vand.u32 2147483648, %v2626_v47 }
 0x1cf   : > { %v1378_v56 = vrot.slane %v1377_v48, 2 }
 0x1d0   : > { %v1285_v52 = vpop.f32.mrf.mxu2  ;;  %v1385_v57 = vrot.slane %v1384_v49, 2  ;;  %v1452_v51 = vmul.f32 %v2643_v11, %v1451_v40 }
 0x1d1   : > { %v1299_v53 = vpop.f32.mrf.mxu3  ;;  %v1286_v58 = vadd.f32 %v1285_v52, %v2588_v8  ;;  %v1379_v59 = vadd.f32 %v1378_v56, %v1377_v48  ;;  %v1496_v48 = vsub.f32 1.0, %v1495_v34  ;;  %v1458_v52 = vand.u32 2147483647, %v2626_v47 }
 0x1d2   : > { %v1300_v3 = vadd.f32 %v1299_v53, %v2588_v8  ;;  %v1386_v60 = vadd.f32 %v1385_v57, %v1384_v49  ;;  %v2677_v53 = vor.u32 1.1754944e-38, %v1460_v45  ;;  %v1467_v57 = vmul.f32 %v2648_v15, %v1466_v46 }
 0x1d3   : > { %v1316_v61 = vmax.f32 %v1286_v58, 0.0  ;;  %v1380_v17 = vrot.slane %v1379_v59, 1  ;;  %v1497_v55 = vmul.f32 %v2652_v24, %v1496_v48  ;;  %v1473_v58 = vand.u32 2147483647, %v2628_v54 }
 0x1d4   : > { %v1317_v63 = vmax.f32 %v1300_v3, 0.0  ;;  %v1387_v25 = vrot.slane %v1386_v60, 1  ;;  %v1475_v3 = vand.u32 2147483648, %v2628_v54  ;;  %vm2724_vm1 = vcmp.eq.f32.partialorder %v1458_v52, 8.507059e+37 }
 0x1d5   : > { %v1345_v8 = vmul.f32 %v2596_v23, %v1316_v61  ;;  %v1381_v5 = vadd.f32 %v1380_v17, %v1379_v59  ;;  %v1453_v61 = vadd.f32 %v2643_v11, %v1452_v51  ;;  %vm2736_vm6 = vcmp.eq.f32.partialorder %v1473_v58, 8.507059e+37 }
 0x1d6   : > { %v1346_v4 = vmul.f32 %v2596_v23, %v1317_v63  ;;  %v1388_v6 = vadd.f32 %v1387_v25, %v1386_v60 }
 0x1d7   : > { %v1389_v7 = vadd.f32 %v1345_v8, %v1337_v22  ;;  %v1413_v29 = vadd.f32 %v2610_v2, %v1381_v5  ;;  %v1488_v22 = vand.u32 2147483647, %v2632_v10  ;;  %v1490_v8 = vand.u32 2147483648, %v2632_v10 }
 0x1d8   : > { %v1396_v9 = vadd.f32 %v1346_v4, %v1338_v1  ;;  %v1414_v12 = vadd.f32 %v2610_v2, %v1388_v6  ;;  %v1498_v6 = vadd.f32 %v2652_v24, %v1497_v55 }
 0x1d9   : > { %v1390_v13 = vrot.slane %v1389_v7, 4  ;;  %v2019_v16 = vmul.f32 -1.442695, %v1413_v29  ;;  %vm1489_vm3 = vcmp.eq.f32.partialorder %v1488_v22, 8.507059e+37 }
 0x1da   : > { %v1397_v14 = vrot.slane %v1396_v9, 4  ;;  %v2020_v23 = vmul.f32 -1.442695, %v1414_v12  ;;  %v1503_v12 = vand.u32 2147483647, %v2635_v0  ;;  %v1502_v28 = vsel %vm2767_vm14, %v2652_v24, %v1498_v6 }
 0x1db   : > { %v1391_v62 = vadd.f32 %v1390_v13, %v1389_v7  ;;  %2153 = vpow2.f32 %v2019_v16  ;;  %v1505_v13 = vand.u32 2147483648, %v2635_v0 }
 0x1dc   : > { %v1398_v18 = vadd.f32 %v1397_v14, %v1396_v9  ;;  %2155 = vpow2.f32 %v2020_v23  ;;  %v1468_v9 = vadd.f32 %v2648_v15, %v1467_v57  ;;  %vm1504_vm9 = vcmp.eq.f32.partialorder %v1503_v12, 8.507059e+37 }
 0x1dd   : > { %v1392_v20 = vrot.slane %v1391_v62, 2  ;;  %v1506_v24 = vor.u32 1.1754944e-38, %v1505_v13 }
 0x1de   : > { %v1399_v21 = vrot.slane %v1398_v18, 2  ;;  %v1472_v33 = vsel %vm2715_vm15, %v2648_v15, %v1468_v9  ;;  %vm1621_vm15 = vmor %vm2794_vm4, %vm2784_vm0 }
 0x1df   : > { %v1393_v26 = vadd.f32 %v1392_v20, %v1391_v62 }
 0x1e0   : > { %v1400_v27 = vadd.f32 %v1399_v21, %v1398_v18  ;;  %v1476_v21 = vor.u32 1.1754944e-38, %v1475_v3 }
 0x1e1   : > { %v1394_v30 = vrot.slane %v1393_v26, 1  ;;  %v2154_v35 = vpop.eup %2153 }
 0x1e2   : > { %v1401_v31 = vrot.slane %v1400_v27, 1  ;;  %v2156_v38 = vpop.eup %2155  ;;  %v2662_v39 = vadd.f32 1.0, %v2154_v35  ;;  %v1507_v35 = vsel %vm1504_vm9, %v1506_v24, %v1502_v28  ;;  %v1477_v45 = vsel %vm2736_vm6, %v1476_v21, %v1472_v33 }
 0x1e3   : > { %v1395_v36 = vadd.f32 %v1394_v30, %v1393_v26  ;;  %v2665_v41 = vadd.f32 1.0, %v2156_v38 }
 0x1e4   : > { %v1402_v37 = vadd.f32 %v1401_v31, %v1400_v27  ;;  %2157 = vrcp.f32 %v2662_v39  ;;  %v1491_v27 = vor.u32 1.1754944e-38, %v1490_v8  ;;  %vm1514_vm5 = vweird.f32 %v2662_v39 }
 0x1e5   : > { %v1415_v42 = vadd.f32 %v2610_v2, %v1395_v36  ;;  %2159 = vrcp.f32 %v2665_v41  ;;  %v1520_v36 = vand.u32 2147483648, %v2662_v39  ;;  %v1533_v40 = vand.u32 2147483647, %v2665_v41 }
 0x1e6   : > { %v1416_v43 = vadd.f32 %v2610_v2, %v1402_v37  ;;  %v1482_v2 = vmul.f32 %v2650_v19, %v1481_v44 }
 0x1e7   : > { %v2021_v49 = vmul.f32 -1.442695, %v1415_v42  ;;  %v1535_v42 = vand.u32 2147483648, %v2665_v41 }
 0x1e8   : > { %v2022_v50 = vmul.f32 -1.442695, %v1416_v43  ;;  %v1483_v25 = vadd.f32 %v2650_v19, %v1482_v2 }
 0x1e9   : > { %2161 = vpow2.f32 %v2021_v49  ;;  %v1536_v57 = vor.u32 1.1754944e-38, %v1535_v42 }
 0x1ea   : > { %2163 = vpow2.f32 %v2022_v50  ;;  %v2694_v60 = vpop.eup %2157  ;;  %v1487_v26 = vsel %vm2754_vm8, %v2650_v19, %v1483_v25  ;;  %v1457_v19 = vsel %vm2701_vm12, %v2643_v11, %v1453_v61  ;;  %v1518_v11 = vand.u32 2147483647, %v2662_v39 }
 0x1eb   : > { %v2707_v1 = vpop.eup %2159  ;;  %v1510_v17 = vmul.f32 %v2694_v60, %v2662_v39  ;;  %v1492_v34 = vsel %vm1489_vm3, %v1491_v27, %v1487_v26  ;;  %vm1515_vm7 = vweird.f32 %v2694_v60  ;;  %vm1594_vm12 = vcmask 1044484  }
 0x1ec   : > { %v1525_v4 = vmul.f32 %v2707_v1, %v2665_v41  ;;  %vm1530_vm2 = vweird.f32 %v2707_v1  ;;  %v1462_v15 = vsel %vm2724_vm1, %v2677_v53, %v1457_v19  ;;  %vm2818_vm8 = vmand %vm1594_vm12, %vm1623_vm11  ;;  %vm1529_vm1 = vweird.f32 %v2665_v41  ;;  %v1638_v19 = vld [vmem:[%s274_s16] sm:$0xff] }
 0x1ed   : > { %v1511_v7 = vsub.f32 1.0, %v1510_v17  ;;  %vm2826_vm14 = vmor %vm1514_vm5, %vm1515_vm7  ;;  %vm1627_vm3 = vsmask.f32 5376  ;;  %vm2832_vm9 = vcmp.eq.f32.partialorder %v1518_v11, 8.507059e+37  ;;  %v1521_v50 = vor.u32 1.1754944e-38, %v1520_v36 }
 0x1ee   : > { %v1526_v23 = vsub.f32 1.0, %v1525_v4  ;;  %vm2838_vm6 = vmor %vm1529_vm1, %vm1530_vm2  ;;  %v1570_v52 = vpack.c.bf16 %v1507_v35, %v1492_v34  ;;  %vm2953_vm11 = vcmask 1046534   ;;  %vm1534_vm2 = vcmp.eq.f32.partialorder %v1533_v40, 8.507059e+37 }
 0x1ef   : > { %v2162_v54 = vpop.eup %2161  ;;  %v1512_v30 = vmul.f32 %v2694_v60, %v1511_v7  ;;  %vm2856_vm7 = vmor %vm2818_vm8, %vm1621_vm15  ;;  %v1569_v25 = vpack.c.bf16 %v1477_v45, %v1462_v15 }
 0x1f0   : > { %v2164_v16 = vpop.eup %2163  ;;  %v2748_v62 = vadd.f32 1.0, %v2162_v54  ;;  %v1527_v31 = vmul.f32 %v2707_v1, %v1526_v23  ;;  %vm2862_vm5 = vmand %vm1626_vm13, %vm1627_vm3  ;;  %v1578_v4 = vrot.slane %v1570_v52, 6  ;;  %v1579_v5 = vrot.slane %v1570_v52, 1 }
 0x1f1   : > { %v2758_v20 = vadd.f32 1.0, %v2164_v16  ;;  %v1513_v37 = vadd.f32 %v2694_v60, %v1512_v30  ;;  %vm1629_vm15 = vmor %vm2862_vm5, %vm2856_vm7  ;;  %vm1602_vm7 = vcmask 1045508   ;;  %vm1604_vm5 = vcmask 1043456  }
 0x1f2   : > { %2165 = vrcp.f32 %v2748_v62  ;;  %v1528_v38 = vadd.f32 %v2707_v1, %v1527_v31  ;;  %v1548_v59 = vand.u32 2147483647, %v2748_v62  ;;  %vm1544_vm8 = vweird.f32 %v2748_v62 }
 0x1f3   : > { %2167 = vrcp.f32 %v2758_v20  ;;  %v1517_v41 = vsel %vm2826_vm14, %v2694_v60, %v1513_v37  ;;  %vm1631_vm14 = vsmask.f32 6400  ;;  %v1550_v60 = vand.u32 2147483648, %v2748_v62 }
 0x1f4   : > { %v1532_v53 = vsel %vm2838_vm6, %v2707_v1, %v1528_v38  ;;  %v1565_v61 = vand.u32 2147483648, %v2758_v20  ;;  %v1522_v63 = vsel %vm2832_vm9, %v1521_v50, %v1517_v41  ;;  %v1563_v47 = vand.u32 2147483647, %v2758_v20  ;;  %vm2880_vm1 = vmand %vm2953_vm11, %vm1631_vm14 }
 0x1f5   : > { %v1537_v22 = vsel %vm1534_vm2, %v1536_v57, %v1532_v53  ;;  %v1551_v54 = vor.u32 1.1754944e-38, %v1550_v60  ;;  %vm1559_vm3 = vweird.f32 %v2758_v20  ;;  %vm1549_vm9 = vcmp.eq.f32.partialorder %v1548_v59, 8.507059e+37 }
 0x1f6   : > { %v1571_v9 = vpack.c.bf16 %v1537_v22, %v1522_v63  ;;  %v1566_v12 = vor.u32 1.1754944e-38, %v1565_v61  ;;  %vm1634_vm2 = vcmask 1047559   ;;  %vm1564_vm14 = vcmp.eq.f32.partialorder %v1563_v47, 8.507059e+37 }
 0x1f7   : > { %vm1635_vm11 = vsmask.f32 7424  ;;  %v1591_v28 = vsel %vm1588_vm10, %v1578_v4, %v1579_v5 }
 0x1f8   : > { %v2166_v44 = vpop.eup %2165  ;;  %v1580_v18 = vrot.slane %v1571_v9, 4  ;;  %v1581_v21 = vrot.slane %v1571_v9, 7 }
 0x1f9   : > { %v2168_v39 = vpop.eup %2167  ;;  %v1540_v48 = vmul.f32 %v2166_v44, %v2748_v62  ;;  %vm1545_vm0 = vweird.f32 %v2166_v44  ;;  %v1577_v62 = vrot.slane %v1569_v25, 3 }
 0x1fa   : > { %v1555_v2 = vmul.f32 %v2168_v39, %v2758_v20  ;;  %vm1560_vm4 = vweird.f32 %v2168_v39  ;;  %vm1546_vm13 = vmor %vm1544_vm8, %vm1545_vm0  ;;  %v1597_v31 = vsel %vm1594_vm12, %v1580_v18, %v1581_v21 }
 0x1fb   : > { %v1541_v56 = vsub.f32 1.0, %v1540_v48  ;;  %vm1561_vm6 = vmor %vm1559_vm3, %vm1560_vm4  ;;  %vm1592_vm4 = vcmask 1041408  }
 0x1fc   : > { %v1556_v3 = vsub.f32 1.0, %v1555_v2  ;;  %vm2896_vm0 = vmor %vm2880_vm1, %vm1629_vm15  ;;  %vm2997_vm15 = vcmask 1040384   ;;  %vm2998_vm1 = vcmask 1046534  }
 0x1fd   : > { %v1542_v1 = vmul.f32 %v2166_v44, %v1541_v56  ;;  %vm2903_vm8 = vmand %vm1634_vm2, %vm1635_vm11  ;;  %v1587_v30 = vsel %vm2997_vm15, %v1569_v25, %v1577_v62 }
 0x1fe   : > { %v1557_v17 = vmul.f32 %v2168_v39, %v1556_v3  ;;  %vm1637_vm11 = vmor %vm2903_vm8, %vm2896_vm0  ;;  %v1593_v24 = vsel %vm1592_vm4, %v1587_v30, %v1591_v28 }
 0x1ff   : > { %v1543_v8 = vadd.f32 %v2166_v44, %v1542_v1 }
 0x200   : > { %v1558_v7 = vadd.f32 %v2168_v39, %v1557_v17 }
 0x201   : > { %v1547_v29 = vsel %vm1546_vm13, %v2166_v44, %v1543_v8 }
 0x202   : > { %v1552_v13 = vsel %vm1549_vm9, %v1551_v54, %v1547_v29  ;;  %v1562_v14 = vsel %vm1561_vm6, %v2168_v39, %v1558_v7 }
 0x203   : > { %v1567_v16 = vsel %vm1564_vm14, %v1566_v12, %v1562_v14 }
 0x204   : > { %v1572_v23 = vpack.c.bf16 %v1567_v16, %v1552_v13 }
 0x206   : > { %v1582_v27 = vrot.slane %v1572_v23, 2  ;;  %v1583_v10 = vrot.slane %v1572_v23, 5 }
 0x208   : > { %v1601_v0 = vsel %vm2998_vm1, %v1582_v27, %v1583_v10 }
 0x209   : > { %v1603_v32 = vsel %vm1602_vm7, %v1597_v31, %v1601_v0 }
 0x20a   : > { %v1605_v33 = vsel %vm1604_vm5, %v1593_v24, %v1603_v32 }
 0x20b   : > { %v1639_v34 = vsel %vm1637_vm11, %v1605_v33, %v1638_v19 }
 0x20c   : > { %1640 = vst [vmem:[%s274_s16] sm:$0xff] %v1639_v34 }
 0x20d   : > { %2196 = shalt.err (!%p2193_p3)
}
 0x20e   : > { %2094 = dma.vmem_to_hbm [thread:$0]  (%p2315_p5), %s1655_s17, 128, %s1657_s19, %s1642_s20  }
 0x20f PF: > { %p2100_p4 = scmp.ge.s32.totalorder %s2231_s29, 2  ;;  %s1668_s30 = sand.u32 1, %s2219_s26  }
 0x210   : > { %s1669_s10 = scalar_lea.sflag [#allocation4], %s1668_s30 }
 0x211   : > { %p2097_p7 = pnand %p2100_p4, %p2319_p6 }
 0x213   : > { %p2098_p8 = pneg %p2097_p7 }
 0x215   : > { %2214 = dma.done.wait (%p2098_p8), %s1669_s10, 128  }
 0x216   : > { %2216 = vsyncadd (%p2098_p8), %s1669_s10, 4294967168  ;;  %p19_p9 = scmp.ge.s32.totalorder %s2302_s8, 4   ;;  %s2999_s26 = smov %s2223_s27 }
 0x217   : > { %s3000_s27 = smov %s2227_s28  ;;  %s3001_s28 = smov %s2313_s11 }
 0x218   : > { %s3002_s29 = smov %s2302_s8  ;;  %21 = sbr.rel (!%p19_p9) target bundleno = 6 (0x6), region = 83 }
 0x21d   :  { %1675 = vsyncpa [#allocation4], 1 }
 0x21e   :  { %1677 = vsyncpa [#allocation4 + $0x1], 1 }

</bundles_post_ra>
